<compile_context>
chip_gen: v7x
topology: tpu7x:2x2x1
jax: 0.10.0
libtpu: 0.0.40
codegen_flags: <defaults>
</compile_context>

<pallas_src>
import jax
import jax.numpy as jnp
from jax.experimental import pallas as pl
from jax.experimental.pallas import tpu as pltpu


def _variational_layer_kernel(x_ref, wl_ref, ws_ref, bl_ref, bs_ref,
                              loc_ref, scale_ref):
    # x_ref  : (TB, S, n_in)  bf16 (preferred) or f32
    # wl_ref : (n_in, TN) bf16      ws_ref : (n_in, TN) bf16
    # bl_ref : (1, TN) f32          bs_ref : (1, TN) f32
    # loc_ref, scale_ref : (TB, TN) f32
    tb, s_len, n_in = x_ref.shape
    inv_s = jnp.float32(1.0 / s_len)

    x = x_ref[...]
    xb = x if x.dtype == jnp.bfloat16 else x.astype(jnp.bfloat16)

    # --- loc half: linear in x, so mean over S first, then one tiny matmul.
    #     (mean accumulated in f32; only the (TB, n_in) operand hits the MXU)
    x_mean = jnp.sum(x.astype(jnp.float32), axis=1) * inv_s          # [TB, n_in] f32
    loc_ref[...] = (
        jnp.dot(x_mean.astype(jnp.bfloat16), wl_ref[...],
                preferred_element_type=jnp.float32)
        + bl_ref[...]                                                # [TB, TN] f32
    )

    # --- scale half: softplus is per-sample, so the full tall matmul is needed.
    # TODO(synk): the reshape across the sublane dim is only a free relayout
    # when S % 8 == 0; pad S (or pre-flatten x) in the wrapper otherwise.
    x_rows = xb.reshape(tb * s_len, n_in)                            # tall MXU M dim
    y = (jnp.dot(x_rows, ws_ref[...], preferred_element_type=jnp.float32)
         + bs_ref[...])                                              # [TB*S, TN] f32
    # Numerically stable softplus (matches F.softplus), kept in f32.
    sp = jnp.maximum(y, 0.0) + jnp.log1p(jnp.exp(-jnp.abs(y)))
    scale_ref[...] = jnp.sum(sp.reshape(tb, s_len, -1), axis=1) * inv_s + 1e-8


def _vmem_capacity_bytes():
    try:
        return int(pltpu.get_tpu_info().vmem_capacity_bytes)
    except Exception:
        return 64 * 1024 * 1024     # conservative (v7x per-TensorCore VMEM)


def _choose_tn(n_out, n_in, weight_budget_bytes):
    """Output-column tile.  Full n_out when it fits; otherwise the largest
    128-aligned divisor of n_out whose two bf16 weight tiles (double-buffered)
    fit the weight budget (needed for v7x's 64 MiB VMEM)."""
    if n_out % 128 != 0:
        return n_out                     # can't tile below full extent and stay lane-aligned
    cap_cols = max(128, weight_budget_bytes // (2 * 2 * n_in * 2))
    if n_out <= cap_cols:
        return n_out
    best = 128
    for tn in range(128, n_out + 1, 128):
        if n_out % tn == 0 and tn <= cap_cols:
            best = tn
    return best


def _choose_tb(b_pad, s, max_rows, min_grid=4):
    """Largest batch tile TB dividing b_pad with TB % 8 == 0 (or TB == b_pad,
    so the output block's second-minor dim stays tile-legal), TB*S within the
    VMEM row budget, preferring a grid extent >= 4 (so the DMA pipeline runs)
    and >= 2 (so v7x's second TensorCore gets work)."""
    divs = [tb for tb in range(1, b_pad + 1)
            if b_pad % tb == 0 and (tb % 8 == 0 or tb == b_pad)]
    fits = [tb for tb in divs if tb * s <= max_rows] or [min(divs)]
    for extent in (min_grid, 2):
        pref = [tb for tb in fits if b_pad // tb >= extent]
        if pref:
            return max(pref)
    return max(fits)


def variational_layer_forward(x, w, b):
    """x: [B, S, n_in] (bf16 preferred, f32 accepted),
    w: [n_in, 2*n_out] f32, b: [2*n_out] f32.

    Returns (out, [loc_mean, scale_mean]) mirroring VAEDecoderForwardResult:
    out == loc_mean (Normal.predict returns loc), each of shape [B, n_out] f32.
    """
    B, S, n_in = x.shape
    two_n_out = w.shape[1]
    n_out = two_n_out // 2

    # Wrapper-side layout plumbing: split W / b into loc and scale halves and
    # pre-cast the weights to bf16 ONCE (not per grid step inside the kernel).
    w_loc = w[:, :n_out].astype(jnp.bfloat16)
    w_scale = w[:, n_out:].astype(jnp.bfloat16)
    b_loc = b[:n_out].reshape(1, n_out).astype(jnp.float32)
    b_scale = b[n_out:].reshape(1, n_out).astype(jnp.float32)

    # Pad the batch so an 8-aligned batch tile exists; padded rows are zeros
    # (each batch row is independent) and are sliced off below.
    if B > 8 and B % 8 != 0:
        b_pad = ((B + 7) // 8) * 8
        x = jnp.concatenate(
            [x, jnp.zeros((b_pad - B, S, n_in), x.dtype)], axis=0)
    else:
        b_pad = B

    # --- VMEM byte budgeting (v5e/v6e: 128 MiB, v7x: 64 MiB per core) ---
    cap = _vmem_capacity_bytes()
    TN = _choose_tn(n_out, n_in, cap // 8)
    x_itemsize = jnp.dtype(x.dtype).itemsize
    row_bytes = (n_in * x_itemsize * 2      # double-buffered x stream
                 + n_in * 4                 # in-kernel f32/bf16 working copy of the tile
                 + 2 * TN * 4)              # y + softplus intermediates (f32)
    max_rows = max(S, (3 * cap // 8) // row_bytes)
    TB = _choose_tb(b_pad, S, max_rows)
    vmem_limit = int(cap * 3 // 4)          # raise scoped VMEM above 16/32 MiB defaults

    grid = (b_pad // TB, n_out // TN)

    # TODO(synk): when grid[1] == 1 the weight/bias blocks are grid-invariant;
    # single-buffering them (pipeline_mode=pl.Buffered(1)) would halve their
    # resident VMEM footprint and allow a slightly larger TB.
    loc_mean, scale_mean = pl.pallas_call(
        _variational_layer_kernel,
        grid=grid,
        in_specs=[
            pl.BlockSpec((TB, S, n_in), lambda i, j: (i, 0, 0)),   # batch tile of x
            pl.BlockSpec((n_in, TN), lambda i, j: (0, j)),         # W_loc column tile
            pl.BlockSpec((n_in, TN), lambda i, j: (0, j)),         # W_scale column tile
            pl.BlockSpec((1, TN), lambda i, j: (0, j)),            # b_loc
            pl.BlockSpec((1, TN), lambda i, j: (0, j)),            # b_scale
        ],
        out_specs=[
            pl.BlockSpec((TB, TN), lambda i, j: (i, j)),           # loc_mean
            pl.BlockSpec((TB, TN), lambda i, j: (i, j)),           # scale_mean
        ],
        out_shape=[
            jax.ShapeDtypeStruct((b_pad, n_out), jnp.float32),
            jax.ShapeDtypeStruct((b_pad, n_out), jnp.float32),
        ],
        compiler_params=pltpu.CompilerParams(
            dimension_semantics=("parallel", "parallel"),
            vmem_limit_bytes=vmem_limit,
        ),
    )(x, w_loc, w_scale, b_loc, b_scale)

    if b_pad != B:
        loc_mean = loc_mean[:B]
        scale_mean = scale_mean[:B]

    # VAEDecoderForwardResult(x=loc_mean, params=[loc_mean, scale_mean])
    return loc_mean, [loc_mean, scale_mean]


def _reference_forward(x, w, b):
    """Pure-JAX f32 reference of the same PyTorch forward (correctness check)."""
    n_out = w.shape[1] // 2
    y = jnp.einsum("bsi,io->bso", x.astype(jnp.float32), w) + b
    loc = y[..., :n_out]
    scale = jax.nn.softplus(y[..., n_out:]) + 1e-8
    return jnp.mean(loc, axis=1), jnp.mean(scale, axis=1)


if __name__ == "__main__":
    B, S, n_in, n_out = 2, 8, 32, 16

    key = jax.random.PRNGKey(0)
    kx, kw, kb = jax.random.split(key, 3)

    # Deterministic parameter init (same distribution family as nn.Linear init).
    bound = 1.0 / float(n_in) ** 0.5
    w = jax.random.uniform(kw, (n_in, 2 * n_out), jnp.float32, -bound, bound)
    b = jax.random.uniform(kb, (2 * n_out,), jnp.float32, -bound, bound)

    # Producer emits bf16 so the kernel streams half the x bytes (the dominant
    # HBM stream); the f32 reference below uses the same bf16-valued x.
    x = jax.random.normal(kx, (B, S, n_in), jnp.float32).astype(jnp.bfloat16)

    out, (loc_mean, scale_mean) = variational_layer_forward(x, w, b)
    jax.block_until_ready(out)
    jax.block_until_ready(scale_mean)

    ref_loc, ref_scale = _reference_forward(x, w, b)
    assert out.shape == (B, n_out) and scale_mean.shape == (B, n_out)
    # bf16 MXU inputs (f32 accumulation) vs. f32 reference -> loosened tolerance;
    # intentional for this VAE layer.
    assert jnp.allclose(out, ref_loc, atol=3e-2, rtol=3e-2)
    assert jnp.allclose(loc_mean, ref_loc, atol=3e-2, rtol=3e-2)
    assert jnp.allclose(scale_mean, ref_scale, atol=3e-2, rtol=3e-2)

    print("KERNEL_OK")
</pallas_src>

<mosaic_0001>
module attributes {stable_mosaic.version = 11 : i64} {
  func.func @_variational_layer_kernel(%arg0: i32, %arg1: i32, %arg2: memref<2x8x32xbf16, #tpu.memory_space<vmem>>, %arg3: memref<32x16xbf16, #tpu.memory_space<vmem>>, %arg4: memref<32x16xbf16, #tpu.memory_space<vmem>>, %arg5: memref<1x16xf32, #tpu.memory_space<vmem>>, %arg6: memref<1x16xf32, #tpu.memory_space<vmem>>, %arg7: memref<2x16xf32, #tpu.memory_space<vmem>>, %arg8: memref<2x16xf32, #tpu.memory_space<vmem>>) attributes {dimension_semantics = [#tpu.dimension_semantics<parallel>, #tpu.dimension_semantics<parallel>], iteration_bounds = array<i64: 1, 1>, scalar_prefetch = 0 : i64, scratch_operands = 0 : i64, tpu.core_type = #tpu.core_type<tc>, window_params = [{transform_indices = @transform_0, window_bounds = array<i64: 2, 8, 32>}, {transform_indices = @transform_1, window_bounds = array<i64: 32, 16>}, {transform_indices = @transform_2, window_bounds = array<i64: 32, 16>}, {transform_indices = @transform_3, window_bounds = array<i64: 1, 16>}, {transform_indices = @transform_4, window_bounds = array<i64: 1, 16>}, {transform_indices = @transform_5, window_bounds = array<i64: 2, 16>}, {transform_indices = @transform_6, window_bounds = array<i64: 2, 16>}]} {
    %c0 = arith.constant 0 : index
    %c0_0 = arith.constant 0 : index
    %c0_1 = arith.constant 0 : index
    %0 = vector.load %arg2[%c0, %c0_0, %c0_1] : memref<2x8x32xbf16, #tpu.memory_space<vmem>>, vector<2x8x32xbf16>
    %1 = arith.extf %0 : vector<2x8x32xbf16> to vector<2x8x32xf32>
    %cst = arith.constant dense<0.000000e+00> : vector<2x32xf32>
    %2 = vector.multi_reduction <add>, %1, %cst [1] : vector<2x8x32xf32> to vector<2x32xf32>
    %cst_2 = arith.constant 1.250000e-01 : f32
    %3 = vector.broadcast %cst_2 : f32 to vector<2x32xf32>
    %4 = arith.mulf %2, %3 : vector<2x32xf32>
    %5 = arith.truncf %4 : vector<2x32xf32> to vector<2x32xbf16>
    %c0_3 = arith.constant 0 : index
    %c0_4 = arith.constant 0 : index
    %6 = vector.load %arg3[%c0_3, %c0_4] : memref<32x16xbf16, #tpu.memory_space<vmem>>, vector<32x16xbf16>
    %cst_5 = arith.constant dense<0.000000e+00> : vector<2x16xf32>
    %7 = tpu.matmul %5, %6, %cst_5 {dimension_numbers = #tpu.dot_dimension_numbers<[1], [0], [0], [1], [0, 0, 1, 1], [], []>} : vector<2x32xbf16>, vector<32x16xbf16>, vector<2x16xf32> -> vector<2x16xf32>
    %c0_6 = arith.constant 0 : index
    %c0_7 = arith.constant 0 : index
    %8 = vector.load %arg5[%c0_6, %c0_7] : memref<1x16xf32, #tpu.memory_space<vmem>>, vector<1x16xf32>
    %9 = vector.broadcast %8 : vector<1x16xf32> to vector<2x16xf32>
    %10 = arith.addf %7, %9 : vector<2x16xf32>
    %c0_8 = arith.constant 0 : index
    %c0_9 = arith.constant 0 : index
    %11 = vector.load %arg7[%c0_8, %c0_9] : memref<2x16xf32, #tpu.memory_space<vmem>>, vector<2x16xf32>
    tpu.vector_store %arg7[%c0_8, %c0_9], %10 {strides = array<i32>} : memref<2x16xf32, #tpu.memory_space<vmem>>, vector<2x16xf32>,
    %12 = vector.shape_cast %0 : vector<2x8x32xbf16> to vector<16x32xbf16>
    %c0_10 = arith.constant 0 : index
    %c0_11 = arith.constant 0 : index
    %13 = vector.load %arg4[%c0_10, %c0_11] : memref<32x16xbf16, #tpu.memory_space<vmem>>, vector<32x16xbf16>
    %cst_12 = arith.constant dense<0.000000e+00> : vector<16x16xf32>
    %14 = tpu.matmul %12, %13, %cst_12 {dimension_numbers = #tpu.dot_dimension_numbers<[1], [0], [0], [1], [0, 0, 1, 1], [], []>} : vector<16x32xbf16>, vector<32x16xbf16>, vector<16x16xf32> -> vector<16x16xf32>
    %c0_13 = arith.constant 0 : index
    %c0_14 = arith.constant 0 : index
    %15 = vector.load %arg6[%c0_13, %c0_14] : memref<1x16xf32, #tpu.memory_space<vmem>>, vector<1x16xf32>
    %16 = vector.broadcast %15 : vector<1x16xf32> to vector<16x16xf32>
    %17 = arith.addf %14, %16 : vector<16x16xf32>
    %cst_15 = arith.constant 0.000000e+00 : f32
    %18 = vector.broadcast %cst_15 : f32 to vector<16x16xf32>
    %19 = arith.maximumf %17, %18 : vector<16x16xf32>
    %20 = math.absf %17 : vector<16x16xf32>
    %cst_16 = arith.constant 0.000000e+00 : f32
    %21 = vector.broadcast %cst_16 : f32 to vector<16x16xf32>
    %22 = arith.subf %21, %20 : vector<16x16xf32>
    %23 = math.exp %22 : vector<16x16xf32>
    %24 = math.log1p %23 : vector<16x16xf32>
    %25 = arith.addf %19, %24 : vector<16x16xf32>
    %26 = vector.shape_cast %25 : vector<16x16xf32> to vector<2x8x16xf32>
    %cst_17 = arith.constant dense<0.000000e+00> : vector<2x16xf32>
    %27 = vector.multi_reduction <add>, %26, %cst_17 [1] : vector<2x8x16xf32> to vector<2x16xf32>
    %cst_18 = arith.constant 1.250000e-01 : f32
    %28 = vector.broadcast %cst_18 : f32 to vector<2x16xf32>
    %29 = arith.mulf %27, %28 : vector<2x16xf32>
    %cst_19 = arith.constant 9.99999993E-9 : f32
    %30 = vector.broadcast %cst_19 : f32 to vector<2x16xf32>
    %31 = arith.addf %29, %30 : vector<2x16xf32>
    %c0_20 = arith.constant 0 : index
    %c0_21 = arith.constant 0 : index
    %32 = vector.load %arg8[%c0_20, %c0_21] : memref<2x16xf32, #tpu.memory_space<vmem>>, vector<2x16xf32>
    tpu.vector_store %arg8[%c0_20, %c0_21], %31 {strides = array<i32>} : memref<2x16xf32, #tpu.memory_space<vmem>>, vector<2x16xf32>,
    return
  }
  func.func @transform_0(%arg0: i32, %arg1: i32) -> (i32, i32, i32) {
    %c0_i32 = arith.constant 0 : i32
    %c0_i32_0 = arith.constant 0 : i32
    %c0_i32_1 = arith.constant 0 : i32
    return %arg0, %c0_i32, %c0_i32_0 : i32, i32, i32
  }
  func.func @transform_1(%arg0: i32, %arg1: i32) -> (i32, i32) {
    %c0_i32 = arith.constant 0 : i32
    %c0_i32_0 = arith.constant 0 : i32
    return %c0_i32, %arg1 : i32, i32
  }
  func.func @transform_2(%arg0: i32, %arg1: i32) -> (i32, i32) {
    %c0_i32 = arith.constant 0 : i32
    %c0_i32_0 = arith.constant 0 : i32
    return %c0_i32, %arg1 : i32, i32
  }
  func.func @transform_3(%arg0: i32, %arg1: i32) -> (i32, i32) {
    %c0_i32 = arith.constant 0 : i32
    %c0_i32_0 = arith.constant 0 : i32
    return %c0_i32, %arg1 : i32, i32
  }
  func.func @transform_4(%arg0: i32, %arg1: i32) -> (i32, i32) {
    %c0_i32 = arith.constant 0 : i32
    %c0_i32_0 = arith.constant 0 : i32
    return %c0_i32, %arg1 : i32, i32
  }
  func.func @transform_5(%arg0: i32, %arg1: i32) -> (i32, i32) {
    %c0_i32 = arith.constant 0 : i32
    return %arg0, %arg1 : i32, i32
  }
  func.func @transform_6(%arg0: i32, %arg1: i32) -> (i32, i32) {
    %c0_i32 = arith.constant 0 : i32
    return %arg0, %arg1 : i32, i32
  }
}

</mosaic_0001>

<bundles_post_ra>
// kernel: tpu_custom_call.1
= control target key start
LH: loop header
LB: loop body
LE: loop exit
PB: predicated region body
PF: predicated region fallthrough
CT: control target
= control target key end

     0   :  { %12 = vsyncpa [#allocation3], 0  ;;  %v374_v1 = vmov 0.0   ;;  %vm375_vm0 = vmmov 0   ;;  %vm29_vm1 = vcmask 261120   ;;  %s466_s0 = inlined_call_operand.vmem [shape: bf16[2,8,32], index: 0, kind: input, shape index: {}]   ;;  %s467_s1 = inlined_call_operand.vmem [shape: bf16[32,16], index: 1, kind: input, shape index: {}]   ;;  %s468_s2 = inlined_call_operand.vmem [shape: bf16[32,16], index: 2, kind: input, shape index: {}]   ;;  %s469_s3 = inlined_call_operand.vmem [shape: f32[1,16], index: 3, kind: input, shape index: {}]   ;;  %s470_s4 = inlined_call_operand.vmem [shape: f32[1,16], index: 4, kind: input, shape index: {}]   ;;  %s471_s5 = inlined_call_operand.hbm [shape: f32[2,16], index: 5, kind: output, shape index: {0}]   ;;  %s472_s6 = inlined_call_operand.hbm [shape: f32[2,16], index: 6, kind: output, shape index: {1}]  }
   0x1   :  { %v312_v0 = vld [vmem:[%s468_s2] sm:$0xff]   ;;  %300 = vmatprep.subr.bf16.mxu1 %v374_v1  ;;  %v313_v2 = vld [vmem:[%s468_s2 + $0x8] sm:$0xff]   ;;  %292 = vmatprep.subr.bf16.mxu0 %v374_v1 }
   0x2   :  { %301 = vmatpush3.bf16.msra.mxu1 %v312_v0  ;;  %304 = vmatprep.mubr.msk.bf16.mxu1 %vm375_vm0, %v374_v1  ;;  %v25_v3 = vld [vmem:[%s466_s0] sm:$0xff]  }
   0x3   :  { %302 = vmatprep.subr.bf16.mxu1 %v374_v1  ;;  %v27_v4 = vunpack.c.l.bf16 %v25_v3  ;;  %v28_v5 = vunpack.c.h.bf16 %v25_v3  ;;  %v315_v6 = vld [vmem:[%s467_s1] sm:$0xff]   ;;  %296 = vmatprep.mubr.msk.bf16.mxu0 %vm375_vm0, %v374_v1 }
   0x4   :  { %13 = vsyncpa [#allocation5], 0  ;;  %293 = vmatpush3.bf16.msra.mxu0 %v315_v6  ;;  %v316_v9 = vld [vmem:[%s467_s1 + $0x8] sm:$0xff]   ;;  %vm63_vm2 = vcmask 1041409   ;;  %v281_v30 = vld [vmem:[%s470_s4] ss:$0 sm:$0xff] }
   0x5   :  { %v30_v7 = vsel %vm29_vm1, %v27_v4, 0.0  ;;  %v37_v8 = vsel %vm29_vm1, %v28_v5, 0.0  ;;  %294 = vmatprep.subr.bf16.mxu0 %v374_v1  ;;  %v277_v43 = vld [vmem:[%s469_s3] ss:$0 sm:$0xff]  ;;  %s376_s8 = smov [#allocation2]   ;;  %vm121_vm3 = vcmask 123904  }
   0x6   :  { %303 = vmatpush3.bf16.msra.mxu1 %v313_v2  ;;  %v31_v10 = vrot.slane %v30_v7, 4  ;;  %v38_v11 = vrot.slane %v37_v8, 4  ;;  %s255_s4 = sshll.u32 %s376_s8, 4  ;;  %s256_s4 = int_to_ptr.vmem [resolvable:$true] %s255_s4 }
   0x7   :  { %s326_s9 = scalar_lea.vmem %s256_s4, 32  ;;  %p331_p1 = scmp.lt.s32.totalorder %s256_s4, %s256_s4 }
   0x8   :  { %v32_v12 = vadd.f32 %v31_v10, %v30_v7  ;;  %v39_v13 = vadd.f32 %v38_v11, %v37_v8  ;;  %295 = vmatpush3.bf16.msra.mxu0 %v316_v9  ;;  %p327_p0 = scmp.ne.s32.totalorder %s256_s4, %s326_s9  ;;  %p332_p2 = scmp.lt.s32.totalorder %s326_s9, %s326_s9 }
   0x9   :  { %305 = vmatmul.mubr.msk.bf16.vlgmr.msra.gmra.mrb[0].mxu1 %vm29_vm1, %v25_v3 }
   0xa   :  { %v33_v14 = vrot.slane %v32_v12, 2  ;;  %v40_v15 = vrot.slane %v39_v13, 2  ;;  %p333_p3 = por %p332_p2, %p331_p1 }
   0xc   :  { %v34_v16 = vadd.f32 %v33_v14, %v32_v12  ;;  %v41_v17 = vadd.f32 %v40_v15, %v39_v13  ;;  %p334_p4 = pnand %p333_p3, %p327_p0 }
   0xe   :  { %v35_v18 = vrot.slane %v34_v16, 1  ;;  %v42_v19 = vrot.slane %v41_v17, 1 }
  0x10   :  { %v36_v20 = vadd.f32 %v35_v18, %v34_v16  ;;  %v43_v21 = vadd.f32 %v42_v19, %v41_v17 }
  0x12   :  { %v44_v22 = vmul.f32 0.125, %v36_v20  ;;  %v45_v23 = vmul.f32 0.125, %v43_v21 }
  0x14   :  { %v46_v24 = vpack.c.bf16 %v44_v22, %v44_v22  ;;  %v47_v25 = vpack.c.bf16 %v45_v23, %v45_v23 }
  0x16   :  { %v61_v26 = vunpack.c.l.b16 %v46_v24  ;;  %v62_v27 = vunpack.c.l.b16 %v47_v25 }
  0x18   :  { %v64_v28 = vsel %vm63_vm2, %v62_v27, %v61_v26 }
  0x19   :  { %v65_v29 = vpack.c.b16 %v64_v28, %v64_v28 }
  0x1b   :  { %297 = vmatmul.mubr.msk.bf16.vlgmr.msra.gmra.mrb[0].mxu0 %vm29_vm1, %v65_v29 }
  0xdc   :  { %v188_v31 = vpop.f32.mrb[0].mxu1 }
  0xdd   :  { %v189_v32 = vadd.f32 %v281_v30, %v188_v31  ;;  %v306_v33 = vpop.f32.mrb[1].mxu1 }
  0xde   :  { %v191_v34 = vpop.f32.mrb[2].mxu1 }
  0xdf   :  { %v197_v35 = vand.u32 2147483647, %v189_v32  ;;  %v192_v36 = vadd.f32 %v281_v30, %v191_v34  ;;  %v307_v37 = vpop.f32.mrb[3].mxu1 }
  0xe1   :  { %v199_v38 = vsub.f32 0.0, %v197_v35  ;;  %v198_v39 = vand.u32 2147483647, %v192_v36 }
  0xe3   :  { %v201_v40 = vmul.f32 1.442695, %v199_v38  ;;  %v200_v41 = vsub.f32 0.0, %v198_v39 }
  0xe5   :  { %318 = vpow2.f32 %v201_v40  ;;  %v203_v42 = vmul.f32 1.442695, %v200_v41 }
  0xe7   :  { %320 = vpow2.f32 %v203_v42 }
  0xee   :  { %v115_v44 = vpop.f32.mrb[0].mxu0 }
  0xef   :  { %v319_v45 = vpop.eup %318  ;;  %v116_v46 = vadd.f32 %v277_v43, %v115_v44  ;;  %v298_v47 = vpop.f32.mrb[1].mxu0 }
  0xf0   :  { %v205_v48 = vadd.f32 1.0, %v319_v45  ;;  %v118_v49 = vpop.f32.mrb[2].mxu0 }
  0xf1   :  { %v321_v50 = vpop.eup %320  ;;  %v299_v51 = vpop.f32.mrb[3].mxu0  ;;  %122 = vst.msk [vmem:[#allocation2] sm:$0x3] %vm121_vm3, %v116_v46 }
  0xf2   :  { %322 = vlog2.f32 %v205_v48  ;;  %v214_v52 = vadd.f32 1.0, %v321_v50 }
  0xf3   :  { %337 = shalt.err (!%p334_p4)
}
  0xf4   :  { %s338_s11 = scalar_lea.hbm %s471_s5, 32 }
  0xf5   :  { %p339_p5 = scmp.ne.s32.totalorder %s471_s5, %s338_s11  ;;  %p342_p6 = scmp.lt.u32.totalorder %s338_s11, %s471_s5 }
  0xf7   :  { %p344_p7 = pnand %p342_p6, %p339_p5 }
  0xf9   :  { %347 = shalt.err (!%p344_p7)
}
  0xfa   :  { %258 = dma.vmem_to_hbm [thread:$0]  %s256_s4, 32, %s471_s5, [#allocation3]   ;;  %324 = vlog2.f32 %v214_v52  ;;  %v208_v53 = vmul.f32 -0.5, %v319_v45  ;;  %v217_v54 = vmul.f32 -0.5, %v321_v50  ;;  %v211_v56 = vand.u32 2147483647, %v319_v45 }
  0xfb   :  { %v220_v59 = vand.u32 2147483647, %v321_v50  ;;  %v195_v63 = vmax.f32 %v189_v32, 0.0  ;;  %vm225_vm5 = vcmask 130048   ;;  %v196_v4 = vmax.f32 %v192_v36, 0.0  ;;  %s377_s5 = smov [#allocation4]  }
  0xfc   :  { %v209_v55 = vadd.f32 1.0, %v208_v53  ;;  %v218_v57 = vadd.f32 1.0, %v217_v54  ;;  %v323_v58 = vpop.eup %322  ;;  %vm212_vm4 = vcmp.lt.f32.partialorder %v211_v56, 0.0004427343  ;;  %s265_s18 = sshll.u32 %s377_s5, 4  ;;  %s266_s18 = int_to_ptr.vmem [resolvable:$true] %s265_s18 }
  0xfd   :  { %v207_v60 = vmul.f32 0.6931472, %v323_v58  ;;  %vm221_vm6 = vcmp.lt.f32.partialorder %v220_v59, 0.0004427343  ;;  %s348_s19 = scalar_lea.vmem %s266_s18, 32  ;;  %p353_p9 = scmp.lt.s32.totalorder %s266_s18, %s266_s18 }
  0xfe   :  { %v210_v61 = vmul.f32 %v319_v45, %v209_v55  ;;  %v219_v2 = vmul.f32 %v321_v50, %v218_v57  ;;  %p349_p8 = scmp.ne.s32.totalorder %s266_s18, %s348_s19  ;;  %p354_p10 = scmp.lt.s32.totalorder %s348_s19, %s348_s19 }
 0x100   :  { %v213_v0 = vsel %vm212_vm4, %v210_v61, %v207_v60  ;;  %p355_p11 = por %p354_p10, %p353_p9 }
 0x101   :  { %v223_v3 = vadd.f32 %v213_v0, %v195_v63 }
 0x102   :  { %p356_p12 = pnand %p355_p11, %p349_p8 }
 0x103   :  { %v226_v6 = vsel %vm225_vm5, %v223_v3, 0.0 }
 0x104   :  { %v325_v62 = vpop.eup %324  ;;  %v227_v8 = vrot.slane %v226_v6, 4 }
 0x105   :  { %v216_v1 = vmul.f32 0.6931472, %v325_v62 }
 0x106   :  { %v228_v10 = vadd.f32 %v227_v8, %v226_v6 }
 0x107   :  { %v222_v5 = vsel %vm221_vm6, %v219_v2, %v216_v1 }
 0x108   :  { %v224_v7 = vadd.f32 %v222_v5, %v196_v4  ;;  %v229_v12 = vrot.slane %v228_v10, 2 }
 0x10a   :  { %v233_v9 = vsel %vm225_vm5, %v224_v7, 0.0  ;;  %v230_v14 = vadd.f32 %v229_v12, %v228_v10 }
 0x10b   :  { %v234_v11 = vrot.slane %v233_v9, 4 }
 0x10c   :  { %v231_v17 = vrot.slane %v230_v14, 1 }
 0x10d   :  { %v235_v13 = vadd.f32 %v234_v11, %v233_v9 }
 0x10e   :  { %v232_v18 = vadd.f32 %v231_v17, %v230_v14 }
 0x10f   :  { %v236_v15 = vrot.slane %v235_v13, 2 }
 0x110   :  { %v240_v21 = vmul.f32 0.125, %v232_v18 }
 0x111   :  { %v237_v16 = vadd.f32 %v236_v15, %v235_v13 }
 0x112   :  { %v242_v23 = vadd.f32 1e-08, %v240_v21 }
 0x113   :  { %v238_v19 = vrot.slane %v237_v16, 1 }
 0x115   :  { %v239_v20 = vadd.f32 %v238_v19, %v237_v16 }
 0x117   :  { %v241_v22 = vmul.f32 0.125, %v239_v20 }
 0x119   :  { %v243_v24 = vadd.f32 1e-08, %v241_v22 }
 0x11b   :  { %v246_v25 = vsel %vm63_vm2, %v243_v24, %v242_v23 }
 0x11c   :  { %248 = vst.msk [vmem:[#allocation4] sm:$0x3] %vm121_vm3, %v246_v25 }
 0x11d   :  { %359 = shalt.err (!%p356_p12)
}
 0x11e   :  { %s360_s22 = scalar_lea.hbm %s472_s6, 32 }
 0x11f   :  { %p361_p13 = scmp.ne.s32.totalorder %s472_s6, %s360_s22  ;;  %p364_p0 = scmp.lt.u32.totalorder %s360_s22, %s472_s6 }
 0x121   :  { %p366_p1 = pnand %p364_p0, %p361_p13 }
 0x123   :  { %369 = shalt.err (!%p366_p1)
}
 0x124   :  { %268 = dma.vmem_to_hbm [thread:$0]  %s266_s18, 32, %s472_s6, [#allocation5]  }
 0x125   :  { %370 = dma.done.wait [#allocation3], 32  }
 0x126   :  { %371 = vsyncadd [#allocation3], 4294967264 }
 0x127   :  { %372 = dma.done.wait [#allocation5], 32  }
 0x128   :  { %373 = vsyncadd [#allocation5], 4294967264 }
 0x129   :  { %275 = vsyncpa [#allocation3], 1 }
 0x12a   :  { %276 = vsyncpa [#allocation5], 1 }

</bundles_post_ra>
